<compile_context>
chip_gen: v7x
topology: tpu7x:2x2x1
jax: 0.10.0
libtpu: 0.0.40
codegen_flags: <defaults>
</compile_context>

<pallas_src>
import functools

import jax
import jax.numpy as jnp
from jax.experimental import pallas as pl
from jax.experimental.pallas import tpu as pltpu

H1, H2, N_OUT = 120, 84, 16   # fc1 / fc2 / fc3 output widths
LANE = 128                    # lane-dense padding for hidden feature dims


def _round_up(x, m):
    return ((x + m - 1) // m) * m


def qnetwork_kernel(x_ref, w_ref, b_ref, out_ref, *, obs_dim, in_rows):
    """x_ref: (TILE_B, obs_dim) f32
    w_ref: (in_rows + 256, 128) bf16  -- [w1 | w2 | w3], segments 16-row aligned
    b_ref: (8, 128) f32               -- rows 0/1/2 = b1/b2/b3 (zero-padded lanes)
    out_ref: (TILE_B, 16) f32
    Padded weight/bias lanes are zero, so padded hidden lanes stay exactly zero."""
    w1 = w_ref[0:obs_dim, :]                        # (obs_dim, 128) bf16
    w2 = w_ref[in_rows:in_rows + LANE, :]           # (128, 128) bf16, tile-aligned
    w3 = w_ref[in_rows + LANE:in_rows + 2 * LANE, :]
    b1 = b_ref[0:1, :]
    b2 = b_ref[1:2, :]
    b3 = b_ref[2:3, :]

    x = x_ref[...].astype(jnp.bfloat16)             # (TILE_B, obs_dim)
    h1 = jnp.dot(x, w1, preferred_element_type=jnp.float32) + b1
    h1 = jnp.maximum(h1, 0.0).astype(jnp.bfloat16)
    h2 = jnp.dot(h1, w2, preferred_element_type=jnp.float32) + b2
    h2 = jnp.maximum(h2, 0.0).astype(jnp.bfloat16)
    y = jnp.dot(h2, w3, preferred_element_type=jnp.float32) + b3
    out_ref[...] = y[:, :N_OUT]


def _pack_weights(params, in_rows):
    """One lane-dense bf16 slab [w1 | w2 | w3] (zero padded) + small f32 bias slab."""
    def pad_w(w, rows):
        w = w.astype(jnp.float32)
        return jnp.pad(w, ((0, rows - w.shape[0]), (0, LANE - w.shape[1])))

    def pad_b(b):
        b = b.astype(jnp.float32).reshape(1, -1)
        return jnp.pad(b, ((0, 0), (0, LANE - b.shape[1])))

    w_slab = jnp.concatenate([
        pad_w(params["w1"], in_rows),   # (in_rows, 128)   cols >= 120 zero
        pad_w(params["w2"], LANE),      # (128, 128)       rows >= 120 / cols >= 84 zero
        pad_w(params["w3"], LANE),      # (128, 128)       rows >= 84  / cols >= 16 zero
    ], axis=0).astype(jnp.bfloat16)

    b_slab = jnp.concatenate([
        pad_b(params["b1"]), pad_b(params["b2"]), pad_b(params["b3"]),
        jnp.zeros((5, LANE), jnp.float32),
    ], axis=0)                          # (8, 128) f32
    return w_slab, b_slab


@functools.partial(jax.jit, static_argnames=("tile_b",))
def _qnetwork_forward(x, params, tile_b):
    x = x.astype(jnp.float32)
    B = x.shape[0]
    obs_dim = params["w1"].shape[0]
    in_rows = _round_up(obs_dim, 16)          # bf16 sublane-tile alignment for w2/w3

    w_slab, b_slab = _pack_weights(params, in_rows)

    # Batch tile: multiple of 8 (f32 sublanes); aim for >= ~4 grid steps so the
    # "parallel" batch axis can be split across both TensorCores on v7x.
    TILE_B = min(tile_b, max(8, _round_up(pl.cdiv(B, 4), 8)))
    grid = (pl.cdiv(B, TILE_B),)              # partial last block; no batch pad

    flops = 2 * B * (obs_dim * H1 + H1 * H2 + H2 * N_OUT)
    bytes_accessed = (x.size * 4 + w_slab.size * 2 + b_slab.size * 4
                      + B * N_OUT * 4)

    kernel = functools.partial(qnetwork_kernel, obs_dim=obs_dim, in_rows=in_rows)

    return pl.pallas_call(
        kernel,
        out_shape=jax.ShapeDtypeStruct((B, N_OUT), jnp.float32),
        grid_spec=pltpu.PrefetchScalarGridSpec(
            num_scalar_prefetch=0,
            grid=grid,
            in_specs=[
                # activations: tiled over batch, pipelined across grid steps
                pl.BlockSpec((TILE_B, obs_dim), lambda i: (i, 0)),
                # packed bf16 weights: constant index_map -> fetched once, VMEM-resident
                pl.BlockSpec(w_slab.shape, lambda i: (0, 0)),
                # exact f32 biases
                pl.BlockSpec(b_slab.shape, lambda i: (0, 0)),
            ],
            out_specs=pl.BlockSpec((TILE_B, N_OUT), lambda i: (i, 0)),
        ),
        compiler_params=pltpu.CompilerParams(
            dimension_semantics=("parallel",),   # 2-TC batch split on v7x
        ),
        cost_estimate=pl.CostEstimate(
            flops=flops, transcendentals=0, bytes_accessed=bytes_accessed),
    )(x, w_slab, b_slab)


def qnetwork_forward(x, params, *, tile_b=1024):
    """x: (B, obs_dim). params: dict w1,b1,w2,b2,w3,b3 with w stored as (in, out)."""
    return _qnetwork_forward(x, params, tile_b)


def init_params(key, obs_dim):
    """Deterministic init mimicking nn.Linear (uniform(-1/sqrt(fan_in), +1/sqrt(fan_in)))."""
    dims = [(obs_dim, H1), (H1, H2), (H2, N_OUT)]
    params = {}
    for i, (fan_in, fan_out) in enumerate(dims, start=1):
        key, kw, kb = jax.random.split(key, 3)
        bound = 1.0 / jnp.sqrt(jnp.float32(fan_in))
        params[f"w{i}"] = jax.random.uniform(
            kw, (fan_in, fan_out), jnp.float32, minval=-bound, maxval=bound)
        params[f"b{i}"] = jax.random.uniform(
            kb, (1, fan_out), jnp.float32, minval=-bound, maxval=bound)
    return params


def reference_forward(x, p):
    """Exact f32 reference (PyTorch semantics)."""
    h1 = jnp.maximum(x @ p["w1"] + p["b1"], 0.0)
    h2 = jnp.maximum(h1 @ p["w2"] + p["b2"], 0.0)
    return h2 @ p["w3"] + p["b3"]


def reference_forward_bf16(x, p):
    """Mirrors the kernel's precision: bf16 matmul operands, f32 accumulate/bias/ReLU."""
    c = lambda a: a.astype(jnp.bfloat16)
    h1 = jnp.maximum(
        jnp.dot(c(x), c(p["w1"]), preferred_element_type=jnp.float32) + p["b1"], 0.0)
    h2 = jnp.maximum(
        jnp.dot(c(h1), c(p["w2"]), preferred_element_type=jnp.float32) + p["b2"], 0.0)
    return jnp.dot(c(h2), c(p["w3"]), preferred_element_type=jnp.float32) + p["b3"]


if __name__ == "__main__":
    key = jax.random.PRNGKey(0)
    obs_dim = 8      # env.observation_space.shape[0]
    batch = 2

    k_params, k_x = jax.random.split(key)
    params = init_params(k_params, obs_dim)
    x = jax.random.normal(k_x, (batch, obs_dim), dtype=jnp.float32)

    out = jax.block_until_ready(qnetwork_forward(x, params))
    assert out.shape == (batch, N_OUT), out.shape
    # Tight check against a bf16-matmul/f32-accumulate reference; loose vs pure f32.
    assert jnp.allclose(out, reference_forward_bf16(x, params), atol=2e-3, rtol=2e-3)
    assert jnp.allclose(out, reference_forward(x, params), atol=5e-2, rtol=5e-2)

    # Training-sized, non-multiple-of-tile batch exercises the multi-step grid and
    # the partial (masked) last block.
    x_big = jax.random.normal(jax.random.PRNGKey(1), (1024 + 3, obs_dim), jnp.float32)
    out_big = jax.block_until_ready(qnetwork_forward(x_big, params))
    assert out_big.shape == (1024 + 3, N_OUT)
    assert jnp.allclose(out_big, reference_forward_bf16(x_big, params), atol=2e-3, rtol=2e-3)
    assert jnp.allclose(out_big, reference_forward(x_big, params), atol=5e-2, rtol=5e-2)

    print("KERNEL_OK")
</pallas_src>

<mosaic_0001>
module attributes {stable_mosaic.version = 11 : i64} {
  func.func @qnetwork_kernel(%arg0: i32, %arg1: memref<8x8xf32, #tpu.memory_space<vmem>>, %arg2: memref<272x128xbf16, #tpu.memory_space<vmem>>, %arg3: memref<8x128xf32, #tpu.memory_space<vmem>>, %arg4: memref<8x16xf32, #tpu.memory_space<vmem>>) attributes {dimension_semantics = [#tpu.dimension_semantics<parallel>], iteration_bounds = array<i64: 1>, scalar_prefetch = 0 : i64, scratch_operands = 0 : i64, tpu.core_type = #tpu.core_type<tc>, window_params = [{transform_indices = @transform_0, window_bounds = array<i64: 8, 8>}, {pipeline_mode = #tpu.pipeline_mode<synchronous>, transform_indices = @transform_1, window_bounds = array<i64: 272, 128>}, {pipeline_mode = #tpu.pipeline_mode<synchronous>, transform_indices = @transform_2, window_bounds = array<i64: 8, 128>}, {transform_indices = @transform_3, window_bounds = array<i64: 8, 16>}]} {
    %c0 = arith.constant 0 : index
    %c0_0 = arith.constant 0 : index
    %0 = vector.load %arg2[%c0, %c0_0] : memref<272x128xbf16, #tpu.memory_space<vmem>>, vector<8x128xbf16>
    %c16 = arith.constant 16 : index
    %c0_1 = arith.constant 0 : index
    %1 = vector.load %arg2[%c16, %c0_1] : memref<272x128xbf16, #tpu.memory_space<vmem>>, vector<128x128xbf16>
    %c144 = arith.constant 144 : index
    %c0_2 = arith.constant 0 : index
    %2 = vector.load %arg2[%c144, %c0_2] : memref<272x128xbf16, #tpu.memory_space<vmem>>, vector<128x128xbf16>
    %c0_3 = arith.constant 0 : index
    %c0_4 = arith.constant 0 : index
    %3 = vector.load %arg3[%c0_3, %c0_4] : memref<8x128xf32, #tpu.memory_space<vmem>>, vector<1x128xf32>
    %c1 = arith.constant 1 : index
    %c0_5 = arith.constant 0 : index
    %4 = vector.load %arg3[%c1, %c0_5] : memref<8x128xf32, #tpu.memory_space<vmem>>, vector<1x128xf32>
    %c2 = arith.constant 2 : index
    %c0_6 = arith.constant 0 : index
    %5 = vector.load %arg3[%c2, %c0_6] : memref<8x128xf32, #tpu.memory_space<vmem>>, vector<1x128xf32>
    %c0_7 = arith.constant 0 : index
    %c0_8 = arith.constant 0 : index
    %6 = vector.load %arg1[%c0_7, %c0_8] : memref<8x8xf32, #tpu.memory_space<vmem>>, vector<8x8xf32>
    %7 = arith.truncf %6 : vector<8x8xf32> to vector<8x8xbf16>
    %cst = arith.constant dense<0.000000e+00> : vector<8x128xf32>
    %8 = tpu.matmul %7, %0, %cst {dimension_numbers = #tpu.dot_dimension_numbers<[1], [0], [0], [1], [0, 0, 1, 1], [], []>} : vector<8x8xbf16>, vector<8x128xbf16>, vector<8x128xf32> -> vector<8x128xf32>
    %9 = vector.broadcast %3 : vector<1x128xf32> to vector<8x128xf32>
    %10 = arith.addf %8, %9 : vector<8x128xf32>
    %cst_9 = arith.constant 0.000000e+00 : f32
    %11 = vector.broadcast %cst_9 : f32 to vector<8x128xf32>
    %12 = arith.maximumf %10, %11 : vector<8x128xf32>
    %13 = arith.truncf %12 : vector<8x128xf32> to vector<8x128xbf16>
    %cst_10 = arith.constant dense<0.000000e+00> : vector<8x128xf32>
    %14 = tpu.matmul %13, %1, %cst_10 {dimension_numbers = #tpu.dot_dimension_numbers<[1], [0], [0], [1], [0, 0, 1, 1], [], []>} : vector<8x128xbf16>, vector<128x128xbf16>, vector<8x128xf32> -> vector<8x128xf32>
    %15 = vector.broadcast %4 : vector<1x128xf32> to vector<8x128xf32>
    %16 = arith.addf %14, %15 : vector<8x128xf32>
    %cst_11 = arith.constant 0.000000e+00 : f32
    %17 = vector.broadcast %cst_11 : f32 to vector<8x128xf32>
    %18 = arith.maximumf %16, %17 : vector<8x128xf32>
    %19 = arith.truncf %18 : vector<8x128xf32> to vector<8x128xbf16>
    %cst_12 = arith.constant dense<0.000000e+00> : vector<8x128xf32>
    %20 = tpu.matmul %19, %2, %cst_12 {dimension_numbers = #tpu.dot_dimension_numbers<[1], [0], [0], [1], [0, 0, 1, 1], [], []>} : vector<8x128xbf16>, vector<128x128xbf16>, vector<8x128xf32> -> vector<8x128xf32>
    %21 = vector.broadcast %5 : vector<1x128xf32> to vector<8x128xf32>
    %22 = arith.addf %20, %21 : vector<8x128xf32>
    %23 = vector.extract_strided_slice %22 {offsets = [0, 0], sizes = [8, 16], strides = [1, 1]} : vector<8x128xf32> to vector<8x16xf32>
    %c0_13 = arith.constant 0 : index
    %c0_14 = arith.constant 0 : index
    %24 = vector.load %arg4[%c0_13, %c0_14] : memref<8x16xf32, #tpu.memory_space<vmem>>, vector<8x16xf32>
    tpu.vector_store %arg4[%c0_13, %c0_14], %23 {strides = array<i32>} : memref<8x16xf32, #tpu.memory_space<vmem>>, vector<8x16xf32>,
    return
  }
  func.func @transform_0(%arg0: i32) -> (i32, i32) {
    %c0_i32 = arith.constant 0 : i32
    %c0_i32_0 = arith.constant 0 : i32
    return %arg0, %c0_i32 : i32, i32
  }
  func.func @transform_1(%arg0: i32) -> (i32, i32) {
    %c0_i32 = arith.constant 0 : i32
    %c0_i32_0 = arith.constant 0 : i32
    %c0_i32_1 = arith.constant 0 : i32
    return %c0_i32, %c0_i32_0 : i32, i32
  }
  func.func @transform_2(%arg0: i32) -> (i32, i32) {
    %c0_i32 = arith.constant 0 : i32
    %c0_i32_0 = arith.constant 0 : i32
    %c0_i32_1 = arith.constant 0 : i32
    return %c0_i32, %c0_i32_0 : i32, i32
  }
  func.func @transform_3(%arg0: i32) -> (i32, i32) {
    %c0_i32 = arith.constant 0 : i32
    %c0_i32_0 = arith.constant 0 : i32
    return %arg0, %c0_i32 : i32, i32
  }
}

</mosaic_0001>

<bundles_post_ra>
// kernel: _qnetwork_forward.1
= control target key start
LH: loop header
LB: loop body
LE: loop exit
PB: predicated region body
PF: predicated region fallthrough
CT: control target
= control target key end

     0   :  { %8 = vsyncpa [#allocation3], 0  ;;  %vm62_vm0 = vcmask 1043456   ;;  %v443_v1 = vmov 0.0   ;;  %vm444_vm1 = vmmov 0   ;;  %vm58_vm2 = vcmask 64512   ;;  %s563_s0 = inlined_call_operand.vmem [shape: f32[2,8], index: 0, kind: input, shape index: {}]   ;;  %s564_s1 = inlined_call_operand.vmem [shape: bf16[272,128], index: 1, kind: input, shape index: {}]   ;;  %s565_s2 = inlined_call_operand.vmem [shape: f32[8,128], index: 2, kind: input, shape index: {}]   ;;  %s566_s3 = inlined_call_operand.hbm [shape: f32[2,16], index: 3, kind: output, shape index: {}]  }
   0x1   :  { %v16_v0 = vld [vmem:[%s564_s1] sm:$0xf]  ;;  %352 = vmatprep.subr.bf16.mxu0 %v443_v1  ;;  %358 = vmatprep.subr.bf16.mxu1 %v443_v1  ;;  %v403_v5 = vld [vmem:[%s564_s1 + $0x8] sm:$0xff]   ;;  %v404_v6 = vld [vmem:[%s564_s1 + $0x10] sm:$0xff]   ;;  %vm294_vm3 = vcmask 130048  }
   0x2   :  { %v64_v2 = vsel %vm62_vm0, %v16_v0, 0  ;;  %v52_v3 = vld [vmem:[%s563_s0] sm:$0xff]  ;;  %354 = vmatprep.mubr.msk.bf16.mxu0 %vm444_vm1, %v443_v1  ;;  %374 = vmatprep.mubr.msk.bf16.mxu1 %vm444_vm1, %v443_v1  ;;  %v405_v7 = vld [vmem:[%s564_s1 + $0x18] sm:$0xff]   ;;  %v407_v9 = vld [vmem:[%s564_s1 + $0x28] sm:$0xff]  }
   0x3   :  { %353 = vmatpush3.bf16.msra.mxu0 %v64_v2  ;;  %v53_v4 = vpack.c.bf16 %v52_v3, %v52_v3  ;;  %359 = vmatpush3.bf16.msra.mxu1 %v403_v5  ;;  %v406_v8 = vld [vmem:[%s564_s1 + $0x20] sm:$0xff]   ;;  %v408_v10 = vld [vmem:[%s564_s1 + $0x30] sm:$0xff]   ;;  %v409_v11 = vld [vmem:[%s564_s1 + $0x38] sm:$0xff]  }
   0x4   :  { %378 = vmatprep.subr.bf16.mxu0 %v443_v1  ;;  %360 = vmatprep.subr.bf16.mxu1 %v443_v1  ;;  %v410_v12 = vld [vmem:[%s564_s1 + $0x40] sm:$0xff]   ;;  %v411_v13 = vld [vmem:[%s564_s1 + $0x48] sm:$0xff]   ;;  %v412_v14 = vld [vmem:[%s564_s1 + $0x50] sm:$0xff]  }
   0x5   :  { %v413_v15 = vld [vmem:[%s564_s1 + $0x58] sm:$0xff]   ;;  %v414_v16 = vld [vmem:[%s564_s1 + $0x60] sm:$0xff]   ;;  %v415_v17 = vld [vmem:[%s564_s1 + $0x68] sm:$0xff]  }
   0x6   :  { %355 = vmatmul.mubr.msk.bf16.vlgmr.msra.gmra.mrb[0].mxu0 %vm58_vm2, %v53_v4  ;;  %v416_v18 = vld [vmem:[%s564_s1 + $0x70] sm:$0xff]   ;;  %v312_v19 = vld [vmem:[%s565_s2] ss:$0 sm:$0xff]  ;;  %v417_v27 = vld [vmem:[%s564_s1 + $0x78] sm:$0xff]  }
   0x7   :  { %394 = vmatprep.mubr.msk.bf16.mxu0 %vm444_vm1, %v443_v1  ;;  %361 = vmatpush3.bf16.msra.mxu1 %v404_v6  ;;  %v418_v28 = vld [vmem:[%s564_s1 + $0x80] sm:$0xff]  }
   0x8   :  { %362 = vmatprep.subr.bf16.mxu1 %v443_v1  ;;  %379 = vmatpush3.bf16.msra.mxu0 %v411_v13  ;;  %v314_v29 = vld [vmem:[%s565_s2 + $0x1] ss:$0 sm:$0xff]  ;;  %v323_v37 = vld [vmem:[%s565_s2 + $0x2] ss:$0 sm:$0xff] }
   0x9   :  { %380 = vmatprep.subr.bf16.mxu0 %v443_v1 }
   0xb   :  { %363 = vmatpush3.bf16.msra.mxu1 %v405_v7 }
   0xc   :  { %364 = vmatprep.subr.bf16.mxu1 %v443_v1  ;;  %381 = vmatpush3.bf16.msra.mxu0 %v412_v14 }
   0xd   :  { %382 = vmatprep.subr.bf16.mxu0 %v443_v1 }
   0xf   :  { %365 = vmatpush3.bf16.msra.mxu1 %v406_v8 }
  0x10   :  { %366 = vmatprep.subr.bf16.mxu1 %v443_v1  ;;  %383 = vmatpush3.bf16.msra.mxu0 %v413_v15 }
  0x11   :  { %384 = vmatprep.subr.bf16.mxu0 %v443_v1 }
  0x13   :  { %367 = vmatpush3.bf16.msra.mxu1 %v407_v9 }
  0x14   :  { %368 = vmatprep.subr.bf16.mxu1 %v443_v1  ;;  %385 = vmatpush3.bf16.msra.mxu0 %v414_v16 }
  0x15   :  { %386 = vmatprep.subr.bf16.mxu0 %v443_v1 }
  0x17   :  { %369 = vmatpush3.bf16.msra.mxu1 %v408_v10 }
  0x18   :  { %370 = vmatprep.subr.bf16.mxu1 %v443_v1  ;;  %387 = vmatpush3.bf16.msra.mxu0 %v415_v17 }
  0x19   :  { %388 = vmatprep.subr.bf16.mxu0 %v443_v1 }
  0x1b   :  { %371 = vmatpush3.bf16.msra.mxu1 %v409_v11 }
  0x1c   :  { %372 = vmatprep.subr.bf16.mxu1 %v443_v1  ;;  %389 = vmatpush3.bf16.msra.mxu0 %v416_v18 }
  0x1d   :  { %390 = vmatprep.subr.bf16.mxu0 %v443_v1 }
  0x1f   :  { %373 = vmatpush3.bf16.msra.mxu1 %v410_v12 }
  0x20   :  { %391 = vmatpush3.bf16.msra.mxu0 %v417_v27 }
  0x21   :  { %392 = vmatprep.subr.bf16.mxu0 %v443_v1 }
  0x24   :  { %393 = vmatpush3.bf16.msra.mxu0 %v418_v28 }
  0xd9   :  { %v100_v20 = vpop.f32.mrb[0].mxu0 }
  0xda   :  { %v101_v21 = vadd.f32 %v312_v19, %v100_v20  ;;  %v356_v22 = vpop.f32.mrb[1].mxu0 }
  0xdb   :  { %v103_v23 = vpop.f32.mrb[2].mxu0 }
  0xdc   :  { %v106_v24 = vmax.f32 %v101_v21, 0.0  ;;  %v357_v25 = vpop.f32.mrb[3].mxu0 }
  0xde   :  { %v107_v26 = vpack.c.bf16 %v106_v24, %v106_v24 }
  0xe0   :  { %375 = vmatmul.mubr.bf16.vlgmr.msra.gmra.mrb[0].mxu1 %v107_v26 }
 0x1b3   :  { %v194_v30 = vpop.f32.mrb[0].mxu1 }
 0x1b4   :  { %v195_v31 = vadd.f32 %v314_v29, %v194_v30  ;;  %v376_v32 = vpop.f32.mrb[1].mxu1 }
 0x1b5   :  { %v197_v33 = vpop.f32.mrb[2].mxu1 }
 0x1b6   :  { %v200_v34 = vmax.f32 %v195_v31, 0.0  ;;  %v377_v35 = vpop.f32.mrb[3].mxu1 }
 0x1b8   :  { %v201_v36 = vpack.c.bf16 %v200_v34, %v200_v34 }
 0x1ba   :  { %395 = vmatmul.mubr.bf16.vlgmr.msra.gmra.mrb[4].mxu0 %v201_v36 }
 0x28d   :  { %v288_v38 = vpop.f32.mrb[4].mxu0 }
 0x28e   :  { %v289_v39 = vadd.f32 %v323_v37, %v288_v38  ;;  %v396_v40 = vpop.f32.mrb[5].mxu0 }
 0x28f   :  { %v291_v41 = vpop.f32.mrb[6].mxu0 }
 0x290   :  { %295 = vst.msk [vmem:[#allocation2] sm:$0xff] %vm294_vm3, %v289_v39  ;;  %v397_v42 = vpop.f32.mrb[7].mxu0 }
 0x291   :  { %300 = vsyncadd [#allocation3], 96  ;;  %s445_s1 = smov [#allocation2]  }
 0x292   :  { %s301_s25 = sshll.u32 %s445_s1, 4  ;;  %s302_s25 = int_to_ptr.vmem [resolvable:$true] %s301_s25 }
 0x293   :  { %s419_s26 = scalar_lea.vmem %s302_s25, 32  ;;  %s423_s27 = scalar_lea.vmem %s302_s25, 128 }
 0x294   :  { %p420_p0 = scmp.ne.s32.totalorder %s302_s25, %s419_s26  ;;  %p424_p1 = scmp.lt.s32.totalorder %s302_s25, %s302_s25 }
 0x295   :  { %p425_p2 = scmp.lt.s32.totalorder %s423_s27, %s419_s26 }
 0x297   :  { %p426_p3 = por %p425_p2, %p424_p1 }
 0x299   :  { %p427_p4 = pnand %p426_p3, %p420_p0 }
 0x29b   :  { %430 = shalt.err (!%p427_p4)
}
 0x29c   :  { %s431_s29 = scalar_lea.hbm %s566_s3, 32 }
 0x29d   :  { %p432_p5 = scmp.ne.s32.totalorder %s566_s3, %s431_s29  ;;  %p435_p6 = scmp.lt.u32.totalorder %s431_s29, %s566_s3 }
 0x29f   :  { %p437_p7 = pnand %p435_p6, %p432_p5 }
 0x2a1   :  { %440 = shalt.err (!%p437_p7)
}
 0x2a2   :  { %s446_s7 = smov 32   ;;  %s447_s8 = smov 2  }
 0x2a3   :  { %307 = dma.vmem_to_hbm [thread:$0]  %s302_s25, 32, %s566_s3, [#allocation3], %s446_s7, %s446_s7, %s447_s8  }
 0x2a4   :  { %441 = dma.done.wait [#allocation3], 128  }
 0x2a5   :  { %442 = vsyncadd [#allocation3], 4294967168 }
 0x2a6   :  { %311 = vsyncpa [#allocation3], 1 }

</bundles_post_ra>
